<compile_context>
chip_gen: v7x
topology: tpu7x:2x2x1
jax: 0.10.0
libtpu: 0.0.40
codegen_flags: <defaults>
</compile_context>

<pallas_src>
import functools

import jax
import jax.numpy as jnp
from jax.experimental import pallas as pl
from jax.experimental.pallas import tpu as pltpu

_LANES = 128
_SUBLANES = 8


def _binary_acc_kernel(y_pred_ref, y_test_ref, acc_ref, *, batch):
    """One reduction step of mean(round(sigmoid(y_pred)) == y_test).

    y_pred_ref : (tr, 128) float VMEM ref  (raw logits, lane-dense, padded with +1)
    y_test_ref : (tr, 128) float VMEM ref  (labels, padded with 0 -> pads count wrong)
    acc_ref    : (1, 1)    f32   VMEM ref  (accumulator / final accuracy)
    """
    t = pl.program_id(0)

    @pl.when(t == 0)
    def _init():
        acc_ref[...] = jnp.zeros_like(acc_ref)

    # round(sigmoid(x)) (round-half-to-even) == (x > 0) exactly:
    # sigmoid(0) = 0.5 rounds to 0.0, and (0 > 0) is False.  No EUP needed.
    pred_labels = (y_pred_ref[...] > 0).astype(y_test_ref.dtype)
    correct = (pred_labels == y_test_ref[...]).astype(jnp.float32)
    acc_ref[...] += jnp.sum(correct, keepdims=True)

    @pl.when(t == pl.num_programs(0) - 1)
    def _finalize():
        # torch divides by y_test.shape[0] (true batch), not the padded count.
        acc_ref[...] = acc_ref[...] / batch


def binary_accuracy(y_pred: jax.Array, y_test: jax.Array, *, tile_rows: int = 512) -> jax.Array:
    """Pallas wrapper reproducing BaseModel.__binary_acc.

    Args:
        y_pred: (B, 1) float logits (any float dtype).
        y_test: (B, 1) float binary labels (0.0 / 1.0), matching `y.unsqueeze(1)`.
        tile_rows: rows (of 128 lanes) per pipelined tile; 512 -> 256 KiB/input/tile.
    Returns:
        () float32 accuracy.
    """
    assert y_pred.shape == y_test.shape and y_pred.ndim >= 1
    batch = y_test.shape[0]  # torch's divisor is y_test.shape[0]

    logits = y_pred.reshape(-1)
    labels = y_test.reshape(-1)
    n = logits.shape[0]

    # Lane-dense layout: pad to a whole number of (tr, 128) tiles, tr % 8 == 0.
    rows = -(-n // _LANES)
    rows = -(-rows // _SUBLANES) * _SUBLANES
    tr = max(_SUBLANES, min(tile_rows, rows))
    tr = -(-tr // _SUBLANES) * _SUBLANES
    rows = -(-rows // tr) * tr
    pad = rows * _LANES - n

    # Padding scheme: padded logits = +1 -> predicted label 1; padded labels = 0
    # -> compare is unequal, so pads contribute 0 to the correct count and the
    # true-batch divisor keeps the metric exact.
    logits = jnp.pad(logits, (0, pad), constant_values=1.0).reshape(rows, _LANES)
    labels = jnp.pad(labels, (0, pad), constant_values=0).reshape(rows, _LANES)

    num_tiles = rows // tr
    out = pl.pallas_call(
        functools.partial(_binary_acc_kernel, batch=batch),
        out_shape=jax.ShapeDtypeStruct((1, 1), jnp.float32),
        grid=(num_tiles,),
        in_specs=[
            pl.BlockSpec((tr, _LANES), lambda i: (i, 0)),
            pl.BlockSpec((tr, _LANES), lambda i: (i, 0)),
        ],
        # Same (0, 0) block every step -> output stays resident in VMEM and
        # doubles as the reduction accumulator (written back to HBM once).
        out_specs=pl.BlockSpec((1, 1), lambda i: (0, 0)),
        compiler_params=pltpu.CompilerParams(dimension_semantics=("arbitrary",)),
    )(logits, labels)
    return out[0, 0]


def _reference(y_pred, y_test):
    labels = jnp.round(jax.nn.sigmoid(y_pred.astype(jnp.float32)))
    correct = (labels == y_test.astype(jnp.float32)).astype(jnp.float32)
    return jnp.sum(correct) / y_test.shape[0]


if __name__ == "__main__":
    key = jax.random.PRNGKey(0)
    k1, k2, k3, k4 = jax.random.split(key, 4)

    # Small case matching the (B, 1) `y.unsqueeze(1)` convention of BaseModel.
    batch = 8
    y_pred = jax.random.normal(k1, (batch, 1), dtype=jnp.float32) * 2.0
    y_test = jax.random.bernoulli(k2, 0.5, (batch, 1)).astype(jnp.float32)

    acc = jax.block_until_ready(binary_accuracy(y_pred, y_test))
    ref = _reference(y_pred, y_test)
    assert jnp.allclose(acc, ref, atol=1e-6), (acc, ref)

    # Larger, non-aligned batch: exercises padding and multi-tile accumulation
    # (tile_rows=8 forces a 2-step reduction grid).
    batch2 = 2000
    y_pred2 = jax.random.normal(k3, (batch2, 1), dtype=jnp.float32) * 2.0
    y_test2 = jax.random.bernoulli(k4, 0.5, (batch2, 1)).astype(jnp.float32)

    acc2 = jax.block_until_ready(binary_accuracy(y_pred2, y_test2, tile_rows=8))
    ref2 = _reference(y_pred2, y_test2)
    assert jnp.allclose(acc2, ref2, atol=1e-6), (acc2, ref2)

    print("KERNEL_OK")
</pallas_src>

<mosaic_0001>
module attributes {stable_mosaic.version = 11 : i64} {
  func.func @_binary_acc_kernel(%arg0: i32, %arg1: memref<8x128xf32, #tpu.memory_space<vmem>>, %arg2: memref<8x128xf32, #tpu.memory_space<vmem>>, %arg3: memref<1x1xf32, #tpu.memory_space<vmem>>) attributes {dimension_semantics = [#tpu.dimension_semantics<arbitrary>], iteration_bounds = array<i64: 1>, scalar_prefetch = 0 : i64, scratch_operands = 0 : i64, tpu.core_type = #tpu.core_type<tc>, window_params = [{transform_indices = @transform_0, window_bounds = array<i64: 8, 128>}, {transform_indices = @transform_1, window_bounds = array<i64: 8, 128>}, {pipeline_mode = #tpu.pipeline_mode<synchronous>, transform_indices = @transform_2, window_bounds = array<i64: 1, 1>}]} {
    %c0_i32 = arith.constant 0 : i32
    %0 = arith.cmpi eq, %arg0, %c0_i32 : i32
    %1 = arith.extui %0 : i1 to i32
    %c0_i32_0 = arith.constant 0 : i32
    %2 = arith.cmpi ne, %1, %c0_i32_0 : i32
    scf.if %2 {
      %cst_11 = arith.constant 0.000000e+00 : f32
      %23 = vector.broadcast %cst_11 : f32 to vector<1x1xf32>
      %c0_12 = arith.constant 0 : index
      %c0_13 = arith.constant 0 : index
      %24 = vector.load %arg3[%c0_12, %c0_13] : memref<1x1xf32, #tpu.memory_space<vmem>>, vector<1x1xf32>
      tpu.vector_store %arg3[%c0_12, %c0_13], %23 {strides = array<i32>} : memref<1x1xf32, #tpu.memory_space<vmem>>, vector<1x1xf32>,
    } else {
    }
    %c0 = arith.constant 0 : index
    %c0_1 = arith.constant 0 : index
    %3 = vector.load %arg1[%c0, %c0_1] : memref<8x128xf32, #tpu.memory_space<vmem>>, vector<8x128xf32>
    %cst = arith.constant 0.000000e+00 : f32
    %4 = vector.broadcast %cst : f32 to vector<8x128xf32>
    %5 = arith.cmpf ogt, %3, %4 : vector<8x128xf32>
    %6 = arith.extui %5 : vector<8x128xi1> to vector<8x128xi32>
    %7 = arith.sitofp %6 : vector<8x128xi32> to vector<8x128xf32>
    %c0_2 = arith.constant 0 : index
    %c0_3 = arith.constant 0 : index
    %8 = vector.load %arg2[%c0_2, %c0_3] : memref<8x128xf32, #tpu.memory_space<vmem>>, vector<8x128xf32>
    %9 = arith.cmpf oeq, %7, %8 : vector<8x128xf32>
    %10 = arith.extui %9 : vector<8x128xi1> to vector<8x128xi32>
    %11 = arith.sitofp %10 : vector<8x128xi32> to vector<8x128xf32>
    %c0_4 = arith.constant 0 : index
    %c0_5 = arith.constant 0 : index
    %12 = vector.load %arg3[%c0_4, %c0_5] : memref<1x1xf32, #tpu.memory_space<vmem>>, vector<1x1xf32>
    %13 = vector.shape_cast %11 : vector<8x128xf32> to vector<1x8x128xf32>
    %cst_6 = arith.constant dense<0.000000e+00> : vector<1xf32>
    %14 = vector.multi_reduction <add>, %13, %cst_6 [1, 2] : vector<1x8x128xf32> to vector<1xf32>
    %15 = vector.shape_cast %14 : vector<1xf32> to vector<1x1x1xf32>
    %16 = vector.extract %15[0, 0, 0] : f32 from vector<1x1x1xf32>
    %17 = vector.broadcast %16 : f32 to vector<1x1xf32>
    %18 = arith.addf %12, %17 : vector<1x1xf32>
    %c0_7 = arith.constant 0 : index
    %c0_8 = arith.constant 0 : index
    %19 = vector.load %arg3[%c0_7, %c0_8] : memref<1x1xf32, #tpu.memory_space<vmem>>, vector<1x1xf32>
    tpu.vector_store %arg3[%c0_7, %c0_8], %18 {strides = array<i32>} : memref<1x1xf32, #tpu.memory_space<vmem>>, vector<1x1xf32>,
    %c0_i32_9 = arith.constant 0 : i32
    %20 = arith.cmpi eq, %arg0, %c0_i32_9 : i32
    %21 = arith.extui %20 : i1 to i32
    %c0_i32_10 = arith.constant 0 : i32
    %22 = arith.cmpi ne, %21, %c0_i32_10 : i32
    scf.if %22 {
      %c0_11 = arith.constant 0 : index
      %c0_12 = arith.constant 0 : index
      %23 = vector.load %arg3[%c0_11, %c0_12] : memref<1x1xf32, #tpu.memory_space<vmem>>, vector<1x1xf32>
      %cst_13 = arith.constant 8.000000e+00 : f32
      %24 = vector.broadcast %cst_13 : f32 to vector<1x1xf32>
      %25 = arith.divf %23, %24 : vector<1x1xf32>
      %c0_14 = arith.constant 0 : index
      %c0_15 = arith.constant 0 : index
      %26 = vector.load %arg3[%c0_14, %c0_15] : memref<1x1xf32, #tpu.memory_space<vmem>>, vector<1x1xf32>
      tpu.vector_store %arg3[%c0_14, %c0_15], %25 {strides = array<i32>} : memref<1x1xf32, #tpu.memory_space<vmem>>, vector<1x1xf32>,
    } else {
    }
    return
  }
  func.func @transform_0(%arg0: i32) -> (i32, i32) {
    %c0_i32 = arith.constant 0 : i32
    %c0_i32_0 = arith.constant 0 : i32
    return %arg0, %c0_i32 : i32, i32
  }
  func.func @transform_1(%arg0: i32) -> (i32, i32) {
    %c0_i32 = arith.constant 0 : i32
    %c0_i32_0 = arith.constant 0 : i32
    return %arg0, %c0_i32 : i32, i32
  }
  func.func @transform_2(%arg0: i32) -> (i32, i32) {
    %c0_i32 = arith.constant 0 : i32
    %c0_i32_0 = arith.constant 0 : i32
    %c0_i32_1 = arith.constant 0 : i32
    return %c0_i32, %c0_i32_0 : i32, i32
  }
}

</mosaic_0001>

<bundles_post_ra>
// kernel: tpu_custom_call.1
= control target key start
LH: loop header
LB: loop body
LE: loop exit
PB: predicated region body
PF: predicated region fallthrough
CT: control target
= control target key end

     0   :  { %7 = vsyncpa [#allocation3], 0  ;;  %s225_s0 = inlined_call_operand.hbm [shape: f32[8,128], index: 0, kind: input, shape index: {}]   ;;  %s226_s1 = inlined_call_operand.hbm [shape: f32[8,128], index: 1, kind: input, shape index: {}]   ;;  %s227_s2 = inlined_call_operand.hbm [shape: f32[1,1], index: 2, kind: output, shape index: {}]  }
   0x1   :  { %8 = vsyncpa [#allocation6], 0 }
   0x2   :  { %9 = vsyncpa [#allocation4], 0  ;;  %s167_s9 = smov [#allocation2]   ;;  %s168_s11 = smov [#allocation5]  }
   0x3   :  { %s16_s10 = sshll.u32 %s167_s9, 4  ;;  %s26_s12 = sshll.u32 %s168_s11, 4  ;;  %s17_s10 = int_to_ptr.vmem [resolvable:$true] %s16_s10  ;;  %s27_s12 = int_to_ptr.vmem [resolvable:$true] %s26_s12 }
   0x4   :  { %s95_s15 = scalar_lea.hbm %s225_s0, 128 }
   0x5   :  { %p96_p0 = scmp.ne.s32.totalorder %s225_s0, %s95_s15  ;;  %p99_p1 = scmp.lt.u32.totalorder %s95_s15, %s225_s0 }
   0x7   :  { %p101_p2 = pnand %p99_p1, %p96_p0 }
   0x9   :  { %104 = shalt.err (!%p101_p2)
}
   0xa   :  { %s105_s20 = scalar_lea.vmem %s17_s10, 128  ;;  %p110_p4 = scmp.lt.s32.totalorder %s17_s10, %s17_s10 }
   0xb   :  { %p106_p3 = scmp.ne.s32.totalorder %s17_s10, %s105_s20  ;;  %p111_p5 = scmp.lt.s32.totalorder %s105_s20, %s105_s20 }
   0xd   :  { %p112_p6 = por %p111_p5, %p110_p4 }
   0xf   :  { %p113_p7 = pnand %p112_p6, %p106_p3 }
  0x11   :  { %116 = shalt.err (!%p113_p7)
}
  0x12   :  { %19 = dma.hbm_to_vmem [thread:$0]  %s225_s0, 128, %s17_s10, [#allocation3]  }
  0x13   :  { %s117_s25 = scalar_lea.hbm %s226_s1, 128 }
  0x14   :  { %p118_p8 = scmp.ne.s32.totalorder %s226_s1, %s117_s25  ;;  %p121_p9 = scmp.lt.u32.totalorder %s117_s25, %s226_s1 }
  0x16   :  { %p123_p10 = pnand %p121_p9, %p118_p8 }
  0x18   :  { %126 = shalt.err (!%p123_p10)
}
  0x19   :  { %s127_s30 = scalar_lea.vmem %s27_s12, 128  ;;  %p132_p12 = scmp.lt.s32.totalorder %s27_s12, %s27_s12 }
  0x1a   :  { %p128_p11 = scmp.ne.s32.totalorder %s27_s12, %s127_s30  ;;  %p133_p13 = scmp.lt.s32.totalorder %s127_s30, %s127_s30 }
  0x1c   :  { %p134_p0 = por %p133_p13, %p132_p12 }
  0x1e   :  { %p135_p1 = pnand %p134_p0, %p128_p11 }
  0x20   :  { %138 = shalt.err (!%p135_p1)
}
  0x21   :  { %29 = dma.hbm_to_vmem [thread:$0]  %s226_s1, 128, %s27_s12, [#allocation6]  }
  0x22   :  { %161 = dma.done.wait [#allocation3], 128  }
  0x23   :  { %162 = vsyncadd [#allocation3], 4294967168 }
  0x24   :  { %163 = dma.done.wait [#allocation6], 128  }
  0x25   :  { %164 = vsyncadd [#allocation6], 4294967168  ;;  %vm40_vm0 = vcmask 0   ;;  %v169_v0 = vmov 0.0   ;;  %v42_v1 = vld [vmem:[#allocation2] sm:$0xff]  ;;  %v46_v2 = vld [vmem:[#allocation5] sm:$0xff] }
  0x26   :  { %41 = vst.msk [vmem:[#allocation7] sm:$0x1] %vm40_vm0, %v169_v0  ;;  %vm43_vm1 = vcmp.gt.f32.partialorder %v42_v1, 0.0  ;;  %s170_s4 = smov [#allocation7]  }
  0x27   :  { %v87_v3 = vsel %vm43_vm1, 1.0, %v169_v0  ;;  %s77_s5 = sshll.u32 %s170_s4, 4  ;;  %s78_s5 = int_to_ptr.vmem [resolvable:$true] %s77_s5 }
  0x28   :  { %vm47_vm2 = vcmp.eq.f32.partialorder %v87_v3, %v46_v2  ;;  %s139_s6 = scalar_lea.vmem %s78_s5, 16  ;;  %s143_s7 = scalar_lea.vmem %s78_s5, 32 }
  0x29   :  { %v88_v4 = vsel %vm47_vm2, 1.0, %v169_v0  ;;  %p140_p2 = scmp.ne.s32.totalorder %s78_s5, %s139_s6  ;;  %p144_p3 = scmp.lt.s32.totalorder %s78_s5, %s78_s5 }
  0x2a   :  { %51 = vadd.xlane.f32.xlu0 %v88_v4  ;;  %p145_p4 = scmp.lt.s32.totalorder %s143_s7, %s139_s6 }
  0x2c   :  { %p146_p5 = por %p145_p4, %p144_p3 }
  0x2d   :  { %v50_v12 = vld [vmem:[#allocation7] sm:$0x1] }
  0x2e   :  { %p147_p6 = pnand %p146_p5, %p140_p2 }
  0xb7   :  { %v52_v5 = vpop.xlane.xlu0 %51 }
  0xb8   :  { %v53_v6 = vrot.slane %v52_v5, 4 }
  0xba   :  { %v54_v7 = vadd.f32 %v53_v6, %v52_v5 }
  0xbc   :  { %v55_v8 = vrot.slane %v54_v7, 2 }
  0xbe   :  { %v56_v9 = vadd.f32 %v55_v8, %v54_v7 }
  0xc0   :  { %v57_v10 = vrot.slane %v56_v9, 1 }
  0xc2   :  { %v58_v11 = vadd.f32 %v57_v10, %v56_v9 }
  0xc4   :  { %89 = vpush %v58_v11 }
  0xf5   :  { %s90_s1 = spop %89 }
  0xf6   :  { %v60_v13 = vstv %s90_s1 }
  0xf7   :  { %v61_v14 = vadd.f32 %v60_v13, %v50_v12 }
  0xf9   :  { %63 = vst.msk [vmem:[#allocation7] sm:$0x1] %vm40_vm0, %v61_v14 }
 0x100   :  { %v67_v15 = vld [vmem:[#allocation7] sm:$0x1] }
 0x101   :  { %v69_v16 = vmul.f32 0.125, %v67_v15 }
 0x103   :  { %70 = vst.msk [vmem:[#allocation7] sm:$0x1] %vm40_vm0, %v69_v16 }
 0x104   :  { %150 = shalt.err (!%p147_p6)
}
 0x105   :  { %s151_s10 = scalar_lea.hbm %s227_s2, 16 }
 0x106   :  { %p152_p7 = scmp.ne.s32.totalorder %s227_s2, %s151_s10  ;;  %p155_p8 = scmp.lt.u32.totalorder %s151_s10, %s227_s2 }
 0x108   :  { %p157_p9 = pnand %p155_p8, %p152_p7 }
 0x10a   :  { %160 = shalt.err (!%p157_p9)
}
 0x10b   :  { %80 = dma.vmem_to_hbm [thread:$0]  %s78_s5, 16, %s227_s2, [#allocation4]  }
 0x10c   :  { %165 = dma.done.wait [#allocation4], 16  }
 0x10d   :  { %166 = vsyncadd [#allocation4], 4294967280 }
 0x10e   :  { %84 = vsyncpa [#allocation3], 1 }
 0x10f   :  { %85 = vsyncpa [#allocation6], 1 }
 0x110   :  { %86 = vsyncpa [#allocation4], 1 }

</bundles_post_ra>
